<compile_context>
chip_gen: v6e
topology: v6e:2x2x1
jax: 0.10.0
libtpu: 0.0.40
codegen_flags: <defaults>
</compile_context>

<pallas_src>
import jax
import jax.numpy as jnp
from jax.experimental import pallas as pl
from jax.experimental.pallas import tpu as pltpu

NEG_SLOPE = 0.2      # PyG GATConv default negative_slope
MASK_VAL = -1e30


def build_adjacency(edge_index, num_nodes):
    """adj[dst, src] = 1 for every edge (src -> dst) plus self loops."""
    src = edge_index[0]
    dst = edge_index[1]
    adj = jnp.zeros((num_nodes, num_nodes), jnp.float32)
    adj = adj.at[dst, src].set(1.0)
    adj = adj.at[jnp.arange(num_nodes), jnp.arange(num_nodes)].set(1.0)  # self loops
    return adj


def build_mask_bias(adj):
    """Additive mask bias: 0 where edge (incl. self loop), -1e30 where no edge.
    Precomputed ONCE (next to fuse_params) so per-step O(N^2) HBM traffic is only the
    cached bf16 read, not an f32->bf16 re-materialization every forward call."""
    return ((adj - 1.0) * 1e30).astype(jnp.bfloat16)


def init_params(key, in_channels, hidden=16):
    ks = jax.random.split(key, 6)
    glorot = lambda k, shape: (jax.random.normal(k, shape, jnp.float32)
                               * jnp.sqrt(2.0 / (shape[0] + shape[1])))
    return {
        # conv1: GATConv(in_channels, 16, heads=1)
        "w1": glorot(ks[0], (in_channels, hidden)),
        "att_src1": glorot(ks[1], (1, hidden)),
        "att_dst1": glorot(ks[2], (1, hidden)),
        "b1": jnp.zeros((1, hidden), jnp.float32),
        # conv2: GATConv(16, 1, heads=1, concat=False)
        "w2": glorot(ks[3], (hidden, 1)),
        "att_src2": glorot(ks[4], (1, 1)),
        "att_dst2": glorot(ks[5], (1, 1)),
        "b2": jnp.zeros((1, 1), jnp.float32),
    }


def fuse_params(params):
    """One-time weight fusion + input consolidation.

    * attention vectors folded into the projection weights:
        w_aug = [W | W @ att_src.T | W @ att_dst.T]
      so each layer does ONE MXU dot and slices h / a_src / a_dst out of it.
    * both layers' augmented weights packed into ONE bf16 array, both biases into
      ONE f32 row -> 4 kernel inputs instead of 6 (fewer DMA descriptors).
    """
    w1, w2 = params["w1"], params["w2"]
    cin, hidden = int(w1.shape[0]), int(w1.shape[1])
    w1_aug = jnp.concatenate(
        [w1, w1 @ params["att_src1"].T, w1 @ params["att_dst1"].T], axis=1)   # [cin, hidden+2]
    w2_aug = jnp.concatenate(
        [w2, w2 @ params["att_src2"].T, w2 @ params["att_dst2"].T], axis=1)   # [hidden, 3]
    w2_pad = jnp.zeros((hidden, hidden + 2), jnp.float32).at[:, :3].set(w2_aug)
    w_pack = jnp.concatenate([w1_aug, w2_pad], axis=0).astype(jnp.bfloat16)   # [cin+hidden, hidden+2]
    b_pack = jnp.concatenate([params["b1"], params["b2"]], axis=1)            # [1, hidden+1] f32
    return {"w_pack": w_pack, "b_pack": b_pack, "hidden": hidden, "cin": cin}


def gat_forward(graph_nodes, mask_bias, fused):
    """graph_nodes: [N, Cin] f32; mask_bias: [N, N] bf16 additive mask (rows = dst)."""
    n, cin = graph_nodes.shape
    hidden = fused["hidden"]
    assert cin == fused["cin"]
    out_lanes = ((n + 127) // 128) * 128          # lane-dense output slab

    # bf16 exp only where the EUP supports it (v6e/v7x); f32 exp elsewhere (v5e & older).
    dev_kind = jax.devices()[0].device_kind.lower()
    use_bf16_exp = ("v6" in dev_kind) or ("v7" in dev_kind)

    def kernel(x_ref, mb_ref, w_ref, b_ref, out_ref):

        def gat_layer(h_in, w_aug_bf16, b, f_out):
            # Fused projection (bf16 operands, f32 accumulation):
            #   cols [0:f_out] = h, col f_out = a_src, col f_out+1 = a_dst.
            h_aug = jnp.dot(h_in.astype(jnp.bfloat16), w_aug_bf16,
                            preferred_element_type=jnp.float32)
            h = h_aug[:, :f_out]                         # [N, f_out]
            a_s = h_aug[:, f_out:f_out + 1]              # [N, 1]
            a_d = h_aug[:, f_out + 1:f_out + 2]          # [N, 1]
            # e[i, j] = LeakyReLU(a_dst[i] + a_src[j]) + mask_bias[i, j]
            e = a_d + jnp.transpose(a_s)                 # [N, N]
            e = jnp.maximum(e, NEG_SLOPE * e)            # LeakyReLU (mul + max)
            e = e + mb_ref[...]                          # bf16 mask promoted in-flight
            # Row-wise masked softmax; normalization deferred past the matmul.
            m = jnp.max(e, axis=1, keepdims=True)
            em = e - m
            if use_bf16_exp:
                p = jnp.exp(em.astype(jnp.bfloat16))     # packed bf16 EUP; masked -> 0
            else:
                p = jnp.exp(em).astype(jnp.bfloat16)     # f32 EUP on v5e (no bf16 EUP)
            # Denominator folded into the aggregation matmul: s_aug = p @ [h | 1];
            # last column is rowsum (same bf16 p as the numerator -> self-consistent).
            h_ones = jnp.concatenate(
                [h.astype(jnp.bfloat16), jnp.ones((h.shape[0], 1), jnp.bfloat16)], axis=1)
            s_aug = jnp.dot(p, h_ones, preferred_element_type=jnp.float32)
            s = s_aug[:, :f_out]
            rowsum = s_aug[:, f_out:f_out + 1]           # >= 1 thanks to self loops
            return s * pl.reciprocal(rowsum, approx=True) + b

        # Unpack consolidated params (static slices of the packed refs).
        w1a = w_ref[:cin, :]                             # [cin, hidden+2]  bf16
        w2a = w_ref[cin:cin + hidden, :3]                # [hidden, 3]      bf16
        b1 = b_ref[:, :hidden]                           # [1, hidden]      f32
        b2 = b_ref[:, hidden:hidden + 1]                 # [1, 1]           f32

        x = x_ref[...]                                   # [N, Cin] f32
        # conv1 (Cin -> hidden) + ReLU
        h1 = jnp.maximum(gat_layer(x, w1a, b1, hidden), 0.0)
        # conv2 (hidden -> 1, heads=1, concat=False)
        h2 = gat_layer(h1, w2a, b2, 1)                   # [N, 1]

        # Actor head: softmax over the N nodes, stored lane-dense.  Padded lanes carry
        # -1e30 logits -> exactly 0 probability.  Exact division so real-node probs sum to 1.
        logits = jnp.transpose(h2)                       # [1, N]
        if out_lanes > n:
            logits = jnp.concatenate(
                [logits, jnp.full((1, out_lanes - n), MASK_VAL, jnp.float32)], axis=1)
        mx = jnp.max(logits, axis=1, keepdims=True)
        pr = jnp.exp(logits - mx)
        out_ref[...] = pr / jnp.sum(pr, axis=1, keepdims=True)

    # TODO(synk): for large graphs (N >~ 1-2k on v6e/v5e, ~half that on v7x's 64 MiB VMEM)
    # switch to a dst-row-tiled grid with an online masked softmax over src tiles,
    # dimension_semantics=("parallel", "arbitrary"); at PPO graph sizes one call suffices.
    vmem = pl.BlockSpec(memory_space=pltpu.MemorySpace.VMEM)
    inputs = (graph_nodes, mask_bias, fused["w_pack"], fused["b_pack"])

    # Raise scoped VMEM only once the whole-graph live set (bf16 mask + f32 e/p temps)
    # outgrows the default budget; at small N leave the default alone.
    live_bytes = n * n * (2 + 3 * 4) + (2 << 20)
    compiler_params = None
    if live_bytes > (16 << 20):
        compiler_params = pltpu.CompilerParams(
            vmem_limit_bytes=int(min(2 * live_bytes, 96 << 20)))

    out_padded = pl.pallas_call(
        kernel,
        out_shape=jax.ShapeDtypeStruct((1, out_lanes), jnp.float32),
        in_specs=[vmem] * len(inputs),
        out_specs=vmem,
        compiler_params=compiler_params,
    )(*inputs)
    return out_padded[:, :n]


if __name__ == "__main__":
    key = jax.random.PRNGKey(0)
    k_x, k_p = jax.random.split(key)

    N, C_IN = 8, 4
    # observations['graph_nodes'].squeeze(0) -> [N, C_IN]
    graph_nodes = jax.random.normal(k_x, (N, C_IN), jnp.float32)
    # observations['graph_edge_links'].squeeze(0) -> [2, E]; bidirectional ring
    src = jnp.concatenate([jnp.arange(N), (jnp.arange(N) + 1) % N])
    dst = jnp.concatenate([(jnp.arange(N) + 1) % N, jnp.arange(N)])
    edge_index = jnp.stack([src, dst]).astype(jnp.int32)            # [2, 2N]

    adj = build_adjacency(edge_index, N)
    mask_bias = build_mask_bias(adj)                                # cached O(N^2) bf16 mask
    params = init_params(k_p, C_IN)
    fused = fuse_params(params)                                     # one-time weight fusion/packing

    out = gat_forward(graph_nodes, mask_bias, fused)                # [1, N] softmax probs
    out = jax.block_until_ready(out)

    assert out.shape == (1, N)
    assert jnp.isfinite(out).all()
    assert jnp.allclose(jnp.sum(out), 1.0, atol=1e-5)
    print("KERNEL_OK")
</pallas_src>

<mosaic_0001>
module attributes {stable_mosaic.version = 11 : i64} {
  func.func @kernel(%arg0: memref<8x4xf32, #tpu.memory_space<vmem>>, %arg1: memref<8x8xbf16, #tpu.memory_space<vmem>>, %arg2: memref<20x18xbf16, #tpu.memory_space<vmem>>, %arg3: memref<1x17xf32, #tpu.memory_space<vmem>>, %arg4: memref<1x128xf32, #tpu.memory_space<vmem>>) attributes {dimension_semantics = [], scalar_prefetch = 0 : i64, scratch_operands = 0 : i64, tpu.core_type = #tpu.core_type<tc>} {
    %c0 = arith.constant 0 : index
    %c0_0 = arith.constant 0 : index
    %0 = vector.load %arg2[%c0, %c0_0] : memref<20x18xbf16, #tpu.memory_space<vmem>>, vector<4x18xbf16>
    %c4 = arith.constant 4 : index
    %c0_1 = arith.constant 0 : index
    %1 = vector.load %arg2[%c4, %c0_1] : memref<20x18xbf16, #tpu.memory_space<vmem>>, vector<16x3xbf16>
    %c0_2 = arith.constant 0 : index
    %c0_3 = arith.constant 0 : index
    %2 = vector.load %arg3[%c0_2, %c0_3] : memref<1x17xf32, #tpu.memory_space<vmem>>, vector<1x16xf32>
    %c0_4 = arith.constant 0 : index
    %c16 = arith.constant 16 : index
    %3 = vector.load %arg3[%c0_4, %c16] : memref<1x17xf32, #tpu.memory_space<vmem>>, vector<1x1xf32>
    %c0_5 = arith.constant 0 : index
    %c0_6 = arith.constant 0 : index
    %4 = vector.load %arg0[%c0_5, %c0_6] : memref<8x4xf32, #tpu.memory_space<vmem>>, vector<8x4xf32>
    %5 = arith.truncf %4 : vector<8x4xf32> to vector<8x4xbf16>
    %cst = arith.constant dense<0.000000e+00> : vector<8x18xf32>
    %6 = tpu.matmul %5, %0, %cst {dimension_numbers = #tpu.dot_dimension_numbers<[1], [0], [0], [1], [0, 0, 1, 1], [], []>} : vector<8x4xbf16>, vector<4x18xbf16>, vector<8x18xf32> -> vector<8x18xf32>
    %7 = vector.extract_strided_slice %6 {offsets = [0, 0], sizes = [8, 16], strides = [1, 1]} : vector<8x18xf32> to vector<8x16xf32>
    %8 = vector.extract_strided_slice %6 {offsets = [0, 16], sizes = [8, 1], strides = [1, 1]} : vector<8x18xf32> to vector<8x1xf32>
    %9 = vector.extract_strided_slice %6 {offsets = [0, 17], sizes = [8, 1], strides = [1, 1]} : vector<8x18xf32> to vector<8x1xf32>
    %10 = tpu.transpose %8, [1, 0] : vector<8x1xf32> -> vector<1x8xf32>
    %11 = vector.broadcast %9 : vector<8x1xf32> to vector<8x8xf32>
    %12 = vector.broadcast %10 : vector<1x8xf32> to vector<8x8xf32>
    %13 = arith.addf %11, %12 : vector<8x8xf32>
    %cst_7 = arith.constant 2.000000e-01 : f32
    %14 = vector.broadcast %cst_7 : f32 to vector<8x8xf32>
    %15 = arith.mulf %14, %13 : vector<8x8xf32>
    %16 = arith.maximumf %13, %15 : vector<8x8xf32>
    %c0_8 = arith.constant 0 : index
    %c0_9 = arith.constant 0 : index
    %17 = vector.load %arg1[%c0_8, %c0_9] : memref<8x8xbf16, #tpu.memory_space<vmem>>, vector<8x8xbf16>
    %18 = arith.extf %17 : vector<8x8xbf16> to vector<8x8xf32>
    %19 = arith.addf %16, %18 : vector<8x8xf32>
    %cst_10 = arith.constant dense<0xFF800000> : vector<8xf32>
    %20 = vector.multi_reduction <maximumf>, %19, %cst_10 [1] : vector<8x8xf32> to vector<8xf32>
    %21 = vector.shape_cast %20 : vector<8xf32> to vector<8x1xf32>
    %22 = vector.broadcast %21 : vector<8x1xf32> to vector<8x8xf32>
    %23 = arith.subf %19, %22 : vector<8x8xf32>
    %24 = math.exp %23 : vector<8x8xf32>
    %25 = arith.truncf %24 : vector<8x8xf32> to vector<8x8xbf16>
    %26 = arith.truncf %7 : vector<8x16xf32> to vector<8x16xbf16>
    %cst_11 = arith.constant 1.000000e+00 : bf16
    %27 = vector.broadcast %cst_11 : bf16 to vector<8x1xbf16>
    %28 = tpu.concatenate %26, %27 in 1 : vector<8x16xbf16>, vector<8x1xbf16> -> vector<8x17xbf16>
    %cst_12 = arith.constant dense<0.000000e+00> : vector<8x17xf32>
    %29 = tpu.matmul %25, %28, %cst_12 {dimension_numbers = #tpu.dot_dimension_numbers<[1], [0], [0], [1], [0, 0, 1, 1], [], []>} : vector<8x8xbf16>, vector<8x17xbf16>, vector<8x17xf32> -> vector<8x17xf32>
    %30 = vector.extract_strided_slice %29 {offsets = [0, 0], sizes = [8, 16], strides = [1, 1]} : vector<8x17xf32> to vector<8x16xf32>
    %31 = vector.extract_strided_slice %29 {offsets = [0, 16], sizes = [8, 1], strides = [1, 1]} : vector<8x17xf32> to vector<8x1xf32>
    %32 = tpu.reciprocal %31 {approx = true} : vector<8x1xf32> -> vector<8x1xf32>
    %33 = vector.broadcast %32 : vector<8x1xf32> to vector<8x16xf32>
    %34 = arith.mulf %30, %33 : vector<8x16xf32>
    %35 = vector.broadcast %2 : vector<1x16xf32> to vector<8x16xf32>
    %36 = arith.addf %34, %35 : vector<8x16xf32>
    %cst_13 = arith.constant 0.000000e+00 : f32
    %37 = vector.broadcast %cst_13 : f32 to vector<8x16xf32>
    %38 = arith.maximumf %36, %37 : vector<8x16xf32>
    %39 = arith.truncf %38 : vector<8x16xf32> to vector<8x16xbf16>
    %cst_14 = arith.constant dense<0.000000e+00> : vector<8x3xf32>
    %40 = tpu.matmul %39, %1, %cst_14 {dimension_numbers = #tpu.dot_dimension_numbers<[1], [0], [0], [1], [0, 0, 1, 1], [], []>} : vector<8x16xbf16>, vector<16x3xbf16>, vector<8x3xf32> -> vector<8x3xf32>
    %41 = vector.extract_strided_slice %40 {offsets = [0, 0], sizes = [8, 1], strides = [1, 1]} : vector<8x3xf32> to vector<8x1xf32>
    %42 = vector.extract_strided_slice %40 {offsets = [0, 1], sizes = [8, 1], strides = [1, 1]} : vector<8x3xf32> to vector<8x1xf32>
    %43 = vector.extract_strided_slice %40 {offsets = [0, 2], sizes = [8, 1], strides = [1, 1]} : vector<8x3xf32> to vector<8x1xf32>
    %44 = tpu.transpose %42, [1, 0] : vector<8x1xf32> -> vector<1x8xf32>
    %45 = vector.broadcast %43 : vector<8x1xf32> to vector<8x8xf32>
    %46 = vector.broadcast %44 : vector<1x8xf32> to vector<8x8xf32>
    %47 = arith.addf %45, %46 : vector<8x8xf32>
    %cst_15 = arith.constant 2.000000e-01 : f32
    %48 = vector.broadcast %cst_15 : f32 to vector<8x8xf32>
    %49 = arith.mulf %48, %47 : vector<8x8xf32>
    %50 = arith.maximumf %47, %49 : vector<8x8xf32>
    %c0_16 = arith.constant 0 : index
    %c0_17 = arith.constant 0 : index
    %51 = vector.load %arg1[%c0_16, %c0_17] : memref<8x8xbf16, #tpu.memory_space<vmem>>, vector<8x8xbf16>
    %52 = arith.extf %51 : vector<8x8xbf16> to vector<8x8xf32>
    %53 = arith.addf %50, %52 : vector<8x8xf32>
    %cst_18 = arith.constant dense<0xFF800000> : vector<8xf32>
    %54 = vector.multi_reduction <maximumf>, %53, %cst_18 [1] : vector<8x8xf32> to vector<8xf32>
    %55 = vector.shape_cast %54 : vector<8xf32> to vector<8x1xf32>
    %56 = vector.broadcast %55 : vector<8x1xf32> to vector<8x8xf32>
    %57 = arith.subf %53, %56 : vector<8x8xf32>
    %58 = math.exp %57 : vector<8x8xf32>
    %59 = arith.truncf %58 : vector<8x8xf32> to vector<8x8xbf16>
    %60 = arith.truncf %41 : vector<8x1xf32> to vector<8x1xbf16>
    %cst_19 = arith.constant 1.000000e+00 : bf16
    %61 = vector.broadcast %cst_19 : bf16 to vector<8x1xbf16>
    %62 = tpu.concatenate %60, %61 in 1 : vector<8x1xbf16>, vector<8x1xbf16> -> vector<8x2xbf16>
    %cst_20 = arith.constant dense<0.000000e+00> : vector<8x2xf32>
    %63 = tpu.matmul %59, %62, %cst_20 {dimension_numbers = #tpu.dot_dimension_numbers<[1], [0], [0], [1], [0, 0, 1, 1], [], []>} : vector<8x8xbf16>, vector<8x2xbf16>, vector<8x2xf32> -> vector<8x2xf32>
    %64 = vector.extract_strided_slice %63 {offsets = [0, 0], sizes = [8, 1], strides = [1, 1]} : vector<8x2xf32> to vector<8x1xf32>
    %65 = vector.extract_strided_slice %63 {offsets = [0, 1], sizes = [8, 1], strides = [1, 1]} : vector<8x2xf32> to vector<8x1xf32>
    %66 = tpu.reciprocal %65 {approx = true} : vector<8x1xf32> -> vector<8x1xf32>
    %67 = arith.mulf %64, %66 : vector<8x1xf32>
    %68 = vector.broadcast %3 : vector<1x1xf32> to vector<8x1xf32>
    %69 = arith.addf %67, %68 : vector<8x1xf32>
    %70 = tpu.transpose %69, [1, 0] : vector<8x1xf32> -> vector<1x8xf32>
    %cst_21 = arith.constant -1.000000e+30 : f32
    %71 = vector.broadcast %cst_21 : f32 to vector<1x120xf32>
    %72 = tpu.concatenate %70, %71 in 1 : vector<1x8xf32>, vector<1x120xf32> -> vector<1x128xf32>
    %cst_22 = arith.constant dense<0xFF800000> : vector<1xf32>
    %73 = vector.multi_reduction <maximumf>, %72, %cst_22 [1] : vector<1x128xf32> to vector<1xf32>
    %74 = vector.shape_cast %73 : vector<1xf32> to vector<1x1xf32>
    %75 = vector.broadcast %74 : vector<1x1xf32> to vector<1x128xf32>
    %76 = arith.subf %72, %75 : vector<1x128xf32>
    %77 = math.exp %76 : vector<1x128xf32>
    %cst_23 = arith.constant dense<0.000000e+00> : vector<1xf32>
    %78 = vector.multi_reduction <add>, %77, %cst_23 [1] : vector<1x128xf32> to vector<1xf32>
    %79 = vector.shape_cast %78 : vector<1xf32> to vector<1x1xf32>
    %80 = vector.broadcast %79 : vector<1x1xf32> to vector<1x128xf32>
    %81 = arith.divf %77, %80 : vector<1x128xf32>
    %c0_24 = arith.constant 0 : index
    %c0_25 = arith.constant 0 : index
    %82 = vector.load %arg4[%c0_24, %c0_25] : memref<1x128xf32, #tpu.memory_space<vmem>>, vector<1x128xf32>
    tpu.vector_store %arg4[%c0_24, %c0_25], %81 {strides = array<i32>} : memref<1x128xf32, #tpu.memory_space<vmem>>, vector<1x128xf32>,
    return
  }
}

</mosaic_0001>

<bundles_post_ra>
// kernel: tpu_custom_call.1
= control target key start
LH: loop header
LB: loop body
LE: loop exit
PB: predicated region body
PF: predicated region fallthrough
CT: control target
= control target key end

     0   :  { %9 = vsyncpa [#allocation3], 0  ;;  %s634_s0 = inlined_call_operand.vmem [shape: f32[8,4], index: 0, kind: input, shape index: {}]   ;;  %s635_s1 = inlined_call_operand.hbm [shape: bf16[8,8], index: 1, kind: input, shape index: {}]   ;;  %s636_s2 = inlined_call_operand.vmem [shape: bf16[20,18], index: 2, kind: input, shape index: {}]   ;;  %s637_s3 = inlined_call_operand.vmem [shape: f32[1,17], index: 3, kind: input, shape index: {}]   ;;  %s638_s4 = inlined_call_operand.hbm [shape: f32[1,128], index: 4, kind: output, shape index: {}]  }
   0x1   :  { %10 = vsyncpa [#allocation4], 0  ;;  %s552_s15 = smov [#allocation2]  }
   0x2   :  { %s19_s16 = sshll.u32 %s552_s15, 4  ;;  %s20_s16 = int_to_ptr.vmem [resolvable:$true] %s19_s16 }
   0x3   :  { %s516_s17 = scalar_lea.vmem %s20_s16, 64  ;;  %p521_p1 = scmp.lt.s32.totalorder %s20_s16, %s20_s16 }
   0x4   :  { %p517_p0 = scmp.ne.s32.totalorder %s20_s16, %s516_s17  ;;  %p522_p2 = scmp.lt.s32.totalorder %s516_s17, %s516_s17 }
   0x6   :  { %p523_p3 = por %p522_p2, %p521_p1 }
   0x8   :  { %p524_p4 = pnand %p523_p3, %p517_p0 }
   0xa   :  { %527 = shalt.err (!%p524_p4)
}
   0xb   :  { %22 = dma.hbm_to_vmem [thread:$0]  %s635_s1, 64, %s20_s16, [#allocation3]  }
   0xc   :  { %548 = dma.done.wait [#allocation3], 64  }
   0xd   :  { %549 = vsyncadd [#allocation3], 4294967232  ;;  %v553_v0 = vmov 0.0   ;;  %vm554_vm0 = vmmov 0   ;;  %vm43_vm1 = vcmask 1041408   ;;  %v37_v2 = vld [vmem:[%s634_s0] sm:$0xff]  ;;  %v127_v14 = vlaneseq }
   0xe   :  { %458 = vmatprep.subr.bf16.mxu0 %v553_v0  ;;  %460 = vmatprep.mubr.msk.bf16.mxu0 %vm554_vm0, %v553_v0  ;;  %v32_v1 = vld [vmem:[%s636_s2] sm:$0x3]  ;;  %v38_v4 = vpack.c.bf16 %v37_v2, %v37_v2  ;;  %vm39_vm2 = vcmask 31744   ;;  %v555_v5 = vmov 17   ;;  %vm146_vm3 = vcmask 130048   ;;  %s556_s1 = smov 112  }
   0xf   :  { %464 = vmatprep.subr.bf16.mxu1 %v553_v0  ;;  %466 = vmatprep.mubr.msk.bf16.mxu1 %vm554_vm0, %v553_v0  ;;  %v45_v3 = vsel %vm43_vm1, %v32_v1, 0  ;;  %vm153_vm4 = vcmask 1043456   ;;  %v601_v15 = vshrl.u32 %v127_v14, 7  ;;  %v606_v20 = vld [vmem:[#allocation2] sm:$0xf]  ;;  %vm137_vm5 = vcmask 64512  }
  0x10   :  { %459 = vmatpush3.bf16.msra.mxu0 %v45_v3  ;;  %491 = vset.pattern.permute.xlu0 %v555_v5  ;;  %v135_v23 = vunpack.c.l.bf16 %v606_v20  ;;  %v557_v32 = vmov 16   ;;  %v494_v37 = vld [vmem:[%s636_s2] sm:$0xfc]   ;;  %v495_v38 = vld [vmem:[%s636_s2 + $0x8] ss:$0 sps:$4 sm:$0x33]  }
  0x11   :  { %470 = vmatprep.subr.bf16.mxu0 %v553_v0  ;;  %v129_v16 = vsub.s32 0, %v601_v15  ;;  %v221_v39 = vrot.slane %v494_v37, 2  ;;  %v222_v40 = vrot.slane %v495_v38, 2  ;;  %vm220_vm6 = vcmask 1045504   ;;  %v445_v43 = vld [vmem:[%s637_s3] ss:$0 sm:$0xff] }
  0x12   :  { %v558_v49 = vmov 2   ;;  %vm324_vm7 = vcmask 7168   ;;  %s559_s2 = smov 127   ;;  %vm415_vm8 = vcmask 1040384   ;;  %s560_s3 = smov [#allocation5]  }
  0x13   :  { %461 = vmatmul.mubr.msk.bf16.vlgmr.msra.gmra.mxu0 %vm39_vm2, %v38_v4  ;;  %v223_v42 = vsel %vm220_vm6, %v221_v39, %v222_v40  ;;  %s434_s29 = sshll.u32 %s560_s3, 4  ;;  %s435_s29 = int_to_ptr.vmem [resolvable:$true] %s434_s29 }
  0x14   :  { %472 = vmatprep.mubr.msk.bf16.mxu0 %vm554_vm0, %v553_v0  ;;  %471 = vmatpush3.bf16.msra.mxu0 %v223_v42  ;;  %s528_s30 = scalar_lea.vmem %s435_s29, 16  ;;  %s532_s5 = scalar_lea.vmem %s435_s29, 32 }
  0x15   :  { %p529_p5 = scmp.ne.s32.totalorder %s435_s29, %s528_s30  ;;  %p533_p6 = scmp.lt.s32.totalorder %s435_s29, %s435_s29 }
  0x16   :  { %p534_p7 = scmp.lt.s32.totalorder %s532_s5, %s528_s30 }
  0x18   :  { %p535_p8 = por %p534_p7, %p533_p6 }
  0x1a   :  { %p536_p9 = pnand %p535_p8, %p529_p5 }
  0xd3   :  { %v81_v6 = vpop.f32.mrf.mxu0 }
  0xd4   :  { %88 = vrot.lane.b32.xlu0 %v81_v6, %s556_s1  ;;  %v145_v7 = vpack.c.bf16 %v81_v6, %v81_v6 }
  0xd5   :  { %v462_v8 = vpop.f32.mrf.mxu0 }
  0xd6   :  { %v149_v9 = vsel %vm146_vm3, %v145_v7, 1065369472 }
  0xd7   :  { %v84_v10 = vpop.f32.mrf.mxu0  ;;  %v154_v11 = vsel %vm153_vm4, %v149_v9, 0 }
  0xd8   :  { %124 = vperm.xlu0 %491, %v81_v6   ;;  %465 = vmatpush3.bf16.msra.mxu1 %v154_v11 }
  0xd9   :  { %v463_v12 = vpop.f32.mrf.mxu0  ;;  %476 = vmatprep.subr.bf16.mxu1 %v553_v0 }
  0xdc   :  { %492 = vset.pattern.permute.xlu0 %v557_v32 }
 0x146   :  { %v89_v13 = vpop.permute.xlu0 %88 }
 0x147   :  { %91 = vxpose.xlu1.b32.start.end [1/1] (short) (narrow) %v89_v13, 8 }
 0x153   :  { %v125_v19 = vpop.permute.xlu0 %124 }
 0x1c3   :  { %v107_v17 = vpop.trf.xlu1 }
 0x1c4   :  { %v130_v18 = vrot.slane %v107_v17, %v129_v16 }
 0x1c6   :  { %v131_v21 = vadd.f32 %v130_v18, %v125_v19 }
 0x1c8   :  { %v132_v22 = vmul.f32 0.2, %v131_v21 }
 0x1ca   :  { %v133_v24 = vmax.f32 %v131_v21, %v132_v22 }
 0x1cc   :  { %v136_v25 = vadd.f32 %v135_v23, %v133_v24 }
 0x1ce   :  { %v138_v26 = vsel %vm137_vm5, %v136_v25, -inf }
 0x1cf   :  { %139 = vmax.xlane.f32.xlu1 %v138_v26 }
 0x258   :  { %v140_v27 = vpop.xlane.xlu1 %139 }
 0x259   :  { %v141_v28 = vsub.f32 %v136_v25, %v140_v27 }
 0x25b   :  { %v142_v29 = vmul.f32 1.442695, %v141_v28 }
 0x25d   :  { %496 = vpow2.f32 %v142_v29 }
 0x26a   :  { %v497_v30 = vpop.eup %496 }
 0x26b   :  { %v144_v31 = vpack.c.bf16 %v497_v30, %v497_v30 }
 0x26d   :  { %467 = vmatmul.mubr.msk.bf16.vlgmr.msra.gmra.mxu1 %vm137_vm5, %v144_v31 }
 0x26e   :  { %478 = vmatprep.mubr.msk.bf16.mxu1 %vm554_vm0, %v553_v0 }
 0x32d   :  { %v190_v33 = vpop.f32.mrf.mxu1 }
 0x32e   :  { %498 = vrcp.f32 %v190_v33 }
 0x32f   :  { %v468_v34 = vpop.f32.mrf.mxu1 }
 0x331   :  { %v193_v35 = vpop.f32.mrf.mxu1 }
 0x333   :  { %v469_v36 = vpop.f32.mrf.mxu1 }
 0x33b   :  { %v499_v41 = vpop.eup %498 }
 0x33c   :  { %199 = vperm.xlu0 %492, %v499_v41  }
 0x340   :  { %493 = vset.pattern.permute.xlu0 %v558_v49 }
 0x3b7   :  { %v200_v44 = vpop.permute.xlu0 %199 }
 0x3b8   :  { %v202_v45 = vmul.f32 %v200_v44, %v190_v33 }
 0x3ba   :  { %v209_v46 = vadd.f32 %v445_v43, %v202_v45 }
 0x3bc   :  { %v210_v47 = vmax.f32 %v209_v46, 0.0 }
 0x3be   :  { %v211_v48 = vpack.c.bf16 %v210_v47, %v210_v47 }
 0x3c0   :  { %473 = vmatmul.mubr.msk.bf16.vlgmr.msra.gmra.mxu0 %vm146_vm3, %v211_v48 }
 0x480   :  { %v262_v50 = vpop.f32.mrf.mxu0 }
 0x481   :  { %v323_v51 = vpack.c.bf16 %v262_v50, %v262_v50  ;;  %269 = vrot.lane.b32.xlu0 %v262_v50, %s559_s2 }
 0x482   :  { %v474_v52 = vpop.f32.mrf.mxu0 }
 0x483   :  { %v326_v53 = vsel %vm324_vm7, %v323_v51, 1065369472 }
 0x484   :  { %v265_v54 = vpop.f32.mrf.mxu0  ;;  %v330_v55 = vsel %vm153_vm4, %v326_v53, 0 }
 0x485   :  { %305 = vperm.xlu0 %493, %v262_v50   ;;  %477 = vmatpush3.bf16.msra.mxu1 %v330_v55 }
 0x486   :  { %v475_v56 = vpop.f32.mrf.mxu0 }
 0x4f3   :  { %v270_v57 = vpop.permute.xlu0 %269 }
 0x4f4   :  { %272 = vxpose.xlu0.b32.start.end [1/1] (short) (narrow) %v270_v57, 8 }
 0x500   :  { %v306_v58 = vpop.permute.xlu0 %305 }
 0x51d   :  { %378 = vrot.lane.b32.xlu0 %v445_v43, %s556_s1 }
 0x570   :  { %v288_v59 = vpop.trf.xlu0 }
 0x571   :  { %v311_v60 = vrot.slane %v288_v59, %v129_v16 }
 0x573   :  { %v312_v61 = vadd.f32 %v311_v60, %v306_v58 }
 0x575   :  { %v313_v62 = vmul.f32 0.2, %v312_v61 }
 0x577   :  { %v314_v63 = vmax.f32 %v312_v61, %v313_v62 }
 0x579   :  { %v315_v0 = vadd.f32 %v314_v63, %v135_v23 }
 0x57b   :  { %v316_v1 = vsel %vm137_vm5, %v315_v0, -inf }
 0x57c   :  { %317 = vmax.xlane.f32.xlu1 %v316_v1 }
 0x58f   :  { %v379_v13 = vpop.permute.xlu0 %378 }
 0x605   :  { %v318_v2 = vpop.xlane.xlu1 %317 }
 0x606   :  { %v319_v3 = vsub.f32 %v315_v0, %v318_v2 }
 0x608   :  { %v320_v4 = vmul.f32 1.442695, %v319_v3 }
 0x60a   :  { %500 = vpow2.f32 %v320_v4 }
 0x617   :  { %v501_v5 = vpop.eup %500 }
 0x618   :  { %v322_v6 = vpack.c.bf16 %v501_v5, %v501_v5 }
 0x61a   :  { %479 = vmatmul.mubr.msk.bf16.vlgmr.msra.gmra.mxu1 %vm137_vm5, %v322_v6 }
 0x6da   :  { %v366_v7 = vpop.f32.mrf.mxu1 }
 0x6db   :  { %502 = vrcp.f32 %v366_v7 }
 0x6dc   :  { %v480_v8 = vpop.f32.mrf.mxu1 }
 0x6de   :  { %v369_v9 = vpop.f32.mrf.mxu1 }
 0x6e0   :  { %v481_v10 = vpop.f32.mrf.mxu1 }
 0x6e8   :  { %v503_v11 = vpop.eup %502 }
 0x6e9   :  { %374 = vrot.lane.b32.xlu1 %v503_v11, %s559_s2 }
 0x75b   :  { %v375_v12 = vpop.permute.xlu1 %374 }
 0x75c   :  { %v377_v14 = vmul.f32 %v375_v12, %v366_v7 }
 0x75e   :  { %v381_v15 = vadd.f32 %v379_v13, %v377_v14 }
 0x760   :  { %382 = vxpose.xlu1.b32.start.end [1/1] (short) (narrow) %v381_v15, 8 }
 0x7dc   :  { %v398_v16 = vpop.trf.xlu1 }
 0x7dd   :  { %v414_v17 = vsel %vm137_vm5, %v398_v16, -1e+30 }
 0x7de   :  { %v416_v18 = vsel %vm415_vm8, %v414_v17, -inf }
 0x7df   :  { %417 = vmax.xlane.f32.xlu0 %v416_v18 }
 0x868   :  { %v418_v19 = vpop.xlane.xlu0 %417 }
 0x869   :  { %v419_v20 = vsub.f32 %v414_v17, %v418_v19 }
 0x86b   :  { %v420_v21 = vmul.f32 1.442695, %v419_v20 }
 0x86d   :  { %504 = vpow2.f32 %v420_v21 }
 0x87a   :  { %v505_v22 = vpop.eup %504 }
 0x87b   :  { %v422_v23 = vsel %vm415_vm8, %v505_v22, 0.0 }
 0x87c   :  { %423 = vadd.xlane.f32.xlu1 %v422_v23 }
 0x905   :  { %v424_v24 = vpop.xlane.xlu1 %423 }
 0x906   :  { %506 = vrcp.f32 %v424_v24 }
 0x913   :  { %v507_v25 = vpop.eup %506 }
 0x914   :  { %v426_v26 = vmul.f32 %v507_v25, %v505_v22 }
 0x916   :  { %427 = vst [vmem:[#allocation5] sm:$0x1] %v426_v26 }
 0x917   :  { %539 = shalt.err (!%p536_p9)
}
 0x918   :  { %437 = dma.vmem_to_hbm [thread:$0]  %s435_s29, 16, %s638_s4, [#allocation4]  }
 0x919   :  { %550 = dma.done.wait [#allocation4], 16  }
 0x91a   :  { %551 = vsyncadd [#allocation4], 4294967280 }
 0x91b   :  { %441 = vsyncpa [#allocation3], 1 }
 0x91c   :  { %442 = vsyncpa [#allocation4], 1 }

</bundles_post_ra>
